<compile_context>
chip_gen: v7x
topology: tpu7x:2x2x1
jax: 0.10.0
libtpu: 0.0.40
codegen_flags: <defaults>
</compile_context>

<pallas_src>
import jax
import jax.numpy as jnp
from jax.experimental import pallas as pl
from jax.experimental.pallas import tpu as pltpu

F32 = jnp.float32
BF16 = jnp.bfloat16
_VMEM_LIMIT = 64 * 1024 * 1024


# ----------------------------------------------------------------------------
# helpers
# ----------------------------------------------------------------------------
def _resident(shape):
    """Weight / bias block that stays resident across the (N, T) grid."""
    return pl.BlockSpec(shape, lambda n, t: (0,) * len(shape))


def _cparams(sem):
    return pltpu.CompilerParams(dimension_semantics=sem,
                                vmem_limit_bytes=_VMEM_LIMIT)


def _l2normalize(x):
    # F.normalize(p=2, eps=1e-12): x / max(||x||_2, 1e-12) == x * rsqrt(max(ss,1e-24))
    ss = jnp.sum(x * x, axis=-1, keepdims=True)
    return x * jax.lax.rsqrt(jnp.maximum(ss, 1e-24))


def _pick_h_tile(h, w, max_rows=8):
    """Largest divisor of h (<= max_rows) whose row tile h_t*w is a multiple of 16."""
    for t in range(min(h, max_rows), 0, -1):
        if h % t == 0 and (t * w) % 16 == 0:
            return t
    return h  # full-height block is always layout-legal


def _pick_ho_tile(h_out):
    return 16 if (h_out % 16 == 0 and h_out >= 16) else h_out


# ----------------------------------------------------------------------------
# Pallas kernels
# ----------------------------------------------------------------------------
def _make_fa_reduce_kernel(n_parts, c):
    """Pass 1 of FA: accumulate f = normalize(K)^T @ relu(V) over HW tiles."""

    def kernel(*refs):
        xs = refs[:n_parts]
        ws = refs[n_parts:2 * n_parts]
        b_ref = refs[2 * n_parts]
        f_ref = refs[2 * n_parts + 1]

        @pl.when(pl.program_id(1) == 0)
        def _init():
            f_ref[...] = jnp.zeros_like(f_ref)

        # fused [V | K] projection of the (possibly split) skip activation
        acc = jnp.dot(xs[0][0], ws[0][...], preferred_element_type=F32)
        for p in range(1, n_parts):
            acc += jnp.dot(xs[p][0], ws[p][...], preferred_element_type=F32)
        r = acc + b_ref[...]
        v = r[:, :c]                     # 128-aligned prefix slice
        k = r[:, c:]                     # 128-aligned offset slice, width 32
        kn = _l2normalize(k)
        vr = jnp.maximum(v, 0.0)
        # contraction over the (small, HW-tiled) sublane axis -> (32, C)
        f_ref[0] += jax.lax.dot_general(
            kn.astype(BF16), vr.astype(BF16),
            (((0,), (0,)), ((), ())), preferred_element_type=F32)

    return kernel


def _make_stage_kernel(n_parts, has_res, c, th, w_in, last):
    """Pass 2 (fused): FA epilogue + residual + decoder conv1x1BN (+ W-interp)."""

    def kernel(*refs):
        i = 0
        xs = refs[i:i + n_parts]; i += n_parts
        xprev = None
        if has_res:
            xprev = refs[i]; i += 1
        f_ref = refs[i]; i += 1
        wvq = refs[i:i + n_parts]; i += n_parts
        bvq_ref = refs[i]; i += 1
        wc_ref = refs[i]; i += 1
        bc_ref = refs[i]; i += 1
        wd_ref = refs[i]; i += 1
        bd_ref = refs[i]; i += 1
        rw_ref = None
        if not last:
            rw_ref = refs[i]; i += 1
        o_ref = refs[i]

        # fused [V | Q] projection (recomputed; avoids an HBM round-trip of V0/Q)
        acc = jnp.dot(xs[0][0], wvq[0][...], preferred_element_type=F32)
        for p in range(1, n_parts):
            acc += jnp.dot(xs[p][0], wvq[p][...], preferred_element_type=F32)
        r = acc + bvq_ref[...]
        v0 = r[:, :c]
        q = r[:, c:]
        qn = _l2normalize(q)

        # y = Qn @ f ; W = relu(conv1x1BN(y)) ; FA out = W + V0 (pre-ReLU V residual)
        y = jnp.dot(qn.astype(BF16), f_ref[0].astype(BF16),
                    preferred_element_type=F32)
        w = jnp.dot(y.astype(BF16), wc_ref[...], preferred_element_type=F32)
        w = jnp.maximum(w + bc_ref[...], 0.0)
        z = w + v0
        if has_res:
            z = z + xprev[0].astype(F32)          # x_prev + FA(skip)

        if last:
            # decoder4: 1-channel conv1x1+BN as a VPU weighted-sum reduction
            u = jnp.sum(z * wd_ref[...], axis=-1, keepdims=True) + bd_ref[...]
            o_ref[0] = u.astype(o_ref.dtype)
        else:
            # decoder conv1x1+BN
            u = jnp.dot(z.astype(BF16), wd_ref[...], preferred_element_type=F32)
            u = (u + bd_ref[...]).astype(BF16)
            # width half of the separable bilinear upsample, row by row
            rw = rw_ref[...].astype(BF16)
            for t in range(th):
                row = u[t * w_in:(t + 1) * w_in, :]          # (Win, Cout)
                o_ref[0, t] = jnp.dot(
                    rw, row, preferred_element_type=F32).astype(o_ref.dtype)

    return kernel


def _hpass_relu_kernel(rh_ref, v_ref, o_ref):
    """Height half of the bilinear upsample + trailing ReLU (decoders 1-3)."""
    y = jnp.dot(rh_ref[...].astype(BF16), v_ref[0], preferred_element_type=F32)
    o_ref[0] = jnp.maximum(y, 0.0).astype(o_ref.dtype)


def _final_upsample_kernel(rh_ref, rwt_ref, x_ref, o_ref):
    """Single-channel separable bilinear upsample: out = Rh @ X @ Rw^T (no ReLU)."""
    t = jnp.dot(rh_ref[...], x_ref[0], preferred_element_type=F32)
    o_ref[0] = jnp.dot(t, rwt_ref[...],
                       preferred_element_type=F32).astype(o_ref.dtype)


# ----------------------------------------------------------------------------
# kernel wrappers (pallas_call plumbing)
# ----------------------------------------------------------------------------
def fa_compute_f(parts, w_parts, bias, c, thw):
    n, hw, _ = parts[0].shape
    t = hw // thw
    in_specs = [pl.BlockSpec((1, thw, p.shape[2]), lambda i, j: (i, j, 0))
                for p in parts]
    in_specs += [_resident(w.shape) for w in w_parts]
    in_specs.append(_resident(bias.shape))
    return pl.pallas_call(
        _make_fa_reduce_kernel(len(parts), c),
        out_shape=jax.ShapeDtypeStruct((n, 32, c), F32),
        grid=(n, t),
        in_specs=in_specs,
        out_specs=pl.BlockSpec((1, 32, c), lambda i, j: (i, 0, 0)),
        compiler_params=_cparams(("parallel", "arbitrary")),
    )(*parts, *w_parts, bias)


def run_stage(parts, x_prev, st):
    """One FA + decoder stage.  parts: list of (N, H*W, C_p) bf16 skip tensors."""
    n, hw, _ = parts[0].shape
    c, cout = st["c"], st["cout"]
    h_in, w_in = st["h_in"], st["w_in"]
    h_out, w_out = st["h_out"], st["w_out"]
    th = st["th"]
    thw = th * w_in
    t = h_in // th
    last = st["last"]

    # ---- pass 1: f = normalize(K)^T @ relu(V), accumulated over HW tiles -----
    f = fa_compute_f(parts, st["w_vk_parts"], st["b_vk"], c, thw)

    # ---- pass 2 (fused): FA epilogue + residual + conv1x1BN (+ W-interp) -----
    in_specs = [pl.BlockSpec((1, thw, p.shape[2]), lambda i, j: (i, j, 0))
                for p in parts]
    args = list(parts)
    if x_prev is not None:
        in_specs.append(pl.BlockSpec((1, thw, c), lambda i, j: (i, j, 0)))
        args.append(x_prev)
    in_specs.append(pl.BlockSpec((1, 32, c), lambda i, j: (i, 0, 0)))
    args.append(f)
    for wp in st["w_vq_parts"]:
        in_specs.append(_resident(wp.shape))
        args.append(wp)
    for nm in ("b_vq", "wc", "bc", "wd", "bd"):
        in_specs.append(_resident(st[nm].shape))
        args.append(st[nm])
    if not last:
        in_specs.append(_resident(st["rw"].shape))
        args.append(st["rw"])

    if last:
        out_shape = jax.ShapeDtypeStruct((n, hw, 1), F32)
        out_spec = pl.BlockSpec((1, thw, 1), lambda i, j: (i, j, 0))
    else:
        out_shape = jax.ShapeDtypeStruct((n, h_in, w_out, cout), BF16)
        out_spec = pl.BlockSpec((1, th, w_out, cout), lambda i, j: (i, j, 0, 0))

    kern = _make_stage_kernel(len(parts), x_prev is not None, c, th, w_in, last)
    mid = pl.pallas_call(
        kern,
        out_shape=out_shape,
        grid=(n, t),
        in_specs=in_specs,
        out_specs=out_spec,
        compiler_params=_cparams(("parallel", "parallel")),
    )(*args)

    if last:
        # single-channel separable upsample, lane-dense (H_out, W_out) output
        x1 = mid.reshape(n, h_in, w_in)
        return pl.pallas_call(
            _final_upsample_kernel,
            out_shape=jax.ShapeDtypeStruct((n, h_out, w_out), F32),
            grid=(n,),
            in_specs=[pl.BlockSpec((h_out, h_in), lambda i: (0, 0)),
                      pl.BlockSpec((w_in, w_out), lambda i: (0, 0)),
                      pl.BlockSpec((1, h_in, w_in), lambda i: (i, 0, 0))],
            out_specs=pl.BlockSpec((1, h_out, w_out), lambda i: (i, 0, 0)),
            compiler_params=_cparams(("parallel",)),
        )(st["rh"], st["rw_t"], x1)

    # ---- pass 3: height interpolation + ReLU ---------------------------------
    v = mid.reshape(n, h_in, w_out * cout)
    tho = st["tho"]
    t_ho = h_out // tho
    y = pl.pallas_call(
        _hpass_relu_kernel,
        out_shape=jax.ShapeDtypeStruct((n, h_out, w_out * cout), BF16),
        grid=(n, t_ho),
        in_specs=[pl.BlockSpec((tho, h_in), lambda i, j: (j, 0)),
                  pl.BlockSpec((1, h_in, w_out * cout), lambda i, j: (i, 0, 0))],
        out_specs=pl.BlockSpec((1, tho, w_out * cout), lambda i, j: (i, j, 0)),
        compiler_params=_cparams(("parallel", "parallel")),
    )(st["rh"], v)
    return y.reshape(n, h_out * w_out, cout)


# ----------------------------------------------------------------------------
# parameter construction (deterministic, synthetic, BN folded for inference)
# ----------------------------------------------------------------------------
def make_convbn_params(key, cin, cout):
    kw, kb, kg, kbe, km, kv = jax.random.split(key, 6)
    wc = jax.random.normal(kw, (cout, cin), F32) / jnp.sqrt(float(cin))
    bc = 0.1 * jax.random.normal(kb, (cout,), F32)
    gamma = 1.0 + 0.1 * jax.random.normal(kg, (cout,), F32)
    beta = 0.1 * jax.random.normal(kbe, (cout,), F32)
    mean = 0.1 * jax.random.normal(km, (cout,), F32)
    var = jnp.abs(jax.random.normal(kv, (cout,), F32)) + 0.5
    scale = gamma / jnp.sqrt(var + 1e-5)
    w_fold = (wc * scale[:, None]).T               # (cin, cout) for x @ W
    b_fold = (bc - mean) * scale + beta
    return w_fold, b_fold[None, :]                 # bias kept 2D: (1, cout)


def interp_matrix_1d(out_size, in_size):
    """1-D linear interpolation matrix, align_corners=True semantics."""
    if in_size == 1:
        return jnp.ones((out_size, 1), F32)
    step = (in_size - 1) / max(out_size - 1, 1)
    src = jnp.arange(out_size, dtype=F32) * step
    i0 = jnp.clip(jnp.floor(src), 0, in_size - 2).astype(jnp.int32)
    frac = src - i0.astype(F32)
    eye = jnp.eye(in_size, dtype=F32)
    return (1.0 - frac)[:, None] * eye[i0] + frac[:, None] * eye[i0 + 1]


def make_stage_params(key, c, part_channels, cout, s_in, s_out, last):
    kq, kk, kv, kc, kd = jax.random.split(key, 5)
    wq, bq = make_convbn_params(kq, c, 32)
    wk, bk = make_convbn_params(kk, c, 32)
    wv, bv = make_convbn_params(kv, c, c)
    wc, bc = make_convbn_params(kc, c, c)
    wd, bd = make_convbn_params(kd, c, cout)

    # fused projections, V first so column slices are 128-aligned
    w_vk = jnp.concatenate([wv, wk], axis=1)       # (c, c+32)
    b_vk = jnp.concatenate([bv, bk], axis=1)
    w_vq = jnp.concatenate([wv, wq], axis=1)
    b_vq = jnp.concatenate([bv, bq], axis=1)

    # row split per concatenated input part (replaces torch.cat(..., dim=1))
    offs, o = [], 0
    for pc in part_channels:
        offs.append((o, o + pc)); o += pc
    w_vk_parts = [w_vk[a:b].astype(BF16) for a, b in offs]
    w_vq_parts = [w_vq[a:b].astype(BF16) for a, b in offs]

    h_in, w_in = s_in
    h_out, w_out = s_out
    rh = interp_matrix_1d(h_out, h_in)             # (h_out, h_in) f32
    rw = interp_matrix_1d(w_out, w_in)             # (w_out, w_in) f32

    st = dict(
        c=c, cout=cout, h_in=h_in, w_in=w_in, h_out=h_out, w_out=w_out,
        th=_pick_h_tile(h_in, w_in), tho=_pick_ho_tile(h_out),
        w_vk_parts=w_vk_parts, b_vk=b_vk,
        w_vq_parts=w_vq_parts, b_vq=b_vq,
        wc=wc.astype(BF16), bc=bc,
        rh=rh, rw=rw, last=last,
    )
    if last:
        st["wd"] = wd.T                            # (1, c) f32 for the VPU reduce
        st["bd"] = bd                              # (1, 1)
        st["rw_t"] = rw.T                          # (w_in, w_out)
    else:
        st["wd"] = wd.astype(BF16)                 # (c, cout)
        st["bd"] = bd                              # (1, cout)
    return st


def nchw_to_flat(x):
    n, c, h, w = x.shape
    return jnp.transpose(x, (0, 2, 3, 1)).reshape(n, h * w, c).astype(BF16)


def fadpn_decoder_forward(acts, stages):
    """acts = ((a00,a01),(a10,a11),(a20,a21),a3) in NCHW, as in the torch module."""
    a0, a1, a2, a3 = acts
    p3 = [nchw_to_flat(a3)]
    p2 = [nchw_to_flat(x) for x in a2]
    p1 = [nchw_to_flat(x) for x in a1]
    p0 = [nchw_to_flat(x) for x in a0]

    x = run_stage(p3, None, stages[0])
    x = run_stage(p2, x, stages[1])
    x = run_stage(p1, x, stages[2])
    x = run_stage(p0, x, stages[3])                # (N, H_out, W_out) f32
    return x[:, None, :, :]                        # NCHW (N, 1, H_out, W_out)


# ----------------------------------------------------------------------------
# demo
# ----------------------------------------------------------------------------
if __name__ == "__main__":
    key = jax.random.PRNGKey(0)

    N = 2
    # channel counts kept multiples of 128 (stand-ins for padded 2688/1552/704/336)
    C3, C2, C1, C0 = 256, 128, 128, 128
    s_in = (4, 8)      # acts[3] spatial
    s1 = (16, 16)      # decoder1 target == acts[2] spatial
    s2 = (32, 32)      # decoder2 target == acts[1] spatial
    s3 = (32, 48)      # decoder3 target == acts[0] spatial
    s4 = (64, 96)      # final output spatial

    k1, k2, k3, k4, kin = jax.random.split(key, 5)
    stages = [
        make_stage_params(k1, C3, [C3],              C2, s_in, s1, last=False),
        make_stage_params(k2, C2, [C2 // 2, C2 // 2], C1, s1,  s2, last=False),
        make_stage_params(k3, C1, [C1 // 2, C1 // 2], C0, s2,  s3, last=False),
        make_stage_params(k4, C0, [C0 // 2, C0 // 2], 1,  s3,  s4, last=True),
    ]

    ks = jax.random.split(kin, 7)
    # acts follow the PyTorch convention: NCHW; acts[0..2] are channel pairs,
    # acts[3] is a single tensor.
    acts = (
        (jax.random.normal(ks[0], (N, C0 // 2, *s3), F32),
         jax.random.normal(ks[1], (N, C0 // 2, *s3), F32)),
        (jax.random.normal(ks[2], (N, C1 // 2, *s2), F32),
         jax.random.normal(ks[3], (N, C1 // 2, *s2), F32)),
        (jax.random.normal(ks[4], (N, C2 // 2, *s1), F32),
         jax.random.normal(ks[5], (N, C2 // 2, *s1), F32)),
        jax.random.normal(ks[6], (N, C3, *s_in), F32),
    )

    out = fadpn_decoder_forward(acts, stages)
    out = jax.block_until_ready(out)
    assert out.shape == (N, 1, *s4), out.shape
    assert bool(jnp.all(jnp.isfinite(out)))
    print("KERNEL_OK")
</pallas_src>

<mosaic_0001>
module attributes {stable_mosaic.version = 11 : i64} {
  func.func @kernel(%arg0: i32, %arg1: i32, %arg2: memref<1x32x256xbf16, #tpu.memory_space<vmem>>, %arg3: memref<256x288xbf16, #tpu.memory_space<vmem>>, %arg4: memref<1x288xf32, #tpu.memory_space<vmem>>, %arg5: memref<1x32x256xf32, #tpu.memory_space<vmem>>) attributes {dimension_semantics = [#tpu.dimension_semantics<parallel>, #tpu.dimension_semantics<arbitrary>], iteration_bounds = array<i64: 2, 1>, scalar_prefetch = 0 : i64, scratch_operands = 0 : i64, tpu.core_type = #tpu.core_type<tc>, window_params = [{transform_indices = @transform_0, window_bounds = array<i64: 1, 32, 256>}, {pipeline_mode = #tpu.pipeline_mode<synchronous>, transform_indices = @transform_1, window_bounds = array<i64: 256, 288>}, {pipeline_mode = #tpu.pipeline_mode<synchronous>, transform_indices = @transform_2, window_bounds = array<i64: 1, 288>}, {transform_indices = @transform_3, window_bounds = array<i64: 1, 32, 256>}]} {
    %c0_i32 = arith.constant 0 : i32
    %0 = arith.cmpi eq, %arg1, %c0_i32 : i32
    %1 = arith.extui %0 : i1 to i32
    %c0_i32_0 = arith.constant 0 : i32
    %2 = arith.cmpi ne, %1, %c0_i32_0 : i32
    scf.if %2 {
      %cst_17 = arith.constant 0.000000e+00 : f32
      %31 = vector.broadcast %cst_17 : f32 to vector<1x32x256xf32>
      %c0_18 = arith.constant 0 : index
      %c0_19 = arith.constant 0 : index
      %c0_20 = arith.constant 0 : index
      %32 = vector.load %arg5[%c0_18, %c0_19, %c0_20] : memref<1x32x256xf32, #tpu.memory_space<vmem>>, vector<1x32x256xf32>
      tpu.vector_store %arg5[%c0_18, %c0_19, %c0_20], %31 {strides = array<i32>} : memref<1x32x256xf32, #tpu.memory_space<vmem>>, vector<1x32x256xf32>,
    } else {
    }
    %c0 = arith.constant 0 : index
    %c0_1 = arith.constant 0 : index
    %c0_2 = arith.constant 0 : index
    %3 = vector.load %arg2[%c0, %c0_1, %c0_2] : memref<1x32x256xbf16, #tpu.memory_space<vmem>>, vector<1x32x256xbf16>
    %4 = vector.shape_cast %3 : vector<1x32x256xbf16> to vector<32x256xbf16>
    %c0_3 = arith.constant 0 : index
    %c0_4 = arith.constant 0 : index
    %5 = vector.load %arg3[%c0_3, %c0_4] : memref<256x288xbf16, #tpu.memory_space<vmem>>, vector<256x288xbf16>
    %cst = arith.constant dense<0.000000e+00> : vector<32x288xf32>
    %6 = tpu.matmul %4, %5, %cst {dimension_numbers = #tpu.dot_dimension_numbers<[1], [0], [0], [1], [0, 0, 1, 1], [], []>} : vector<32x256xbf16>, vector<256x288xbf16>, vector<32x288xf32> -> vector<32x288xf32>
    %c0_5 = arith.constant 0 : index
    %c0_6 = arith.constant 0 : index
    %7 = vector.load %arg4[%c0_5, %c0_6] : memref<1x288xf32, #tpu.memory_space<vmem>>, vector<1x288xf32>
    %8 = vector.broadcast %7 : vector<1x288xf32> to vector<32x288xf32>
    %9 = arith.addf %6, %8 : vector<32x288xf32>
    %10 = vector.extract_strided_slice %9 {offsets = [0, 0], sizes = [32, 256], strides = [1, 1]} : vector<32x288xf32> to vector<32x256xf32>
    %11 = vector.extract_strided_slice %9 {offsets = [0, 256], sizes = [32, 32], strides = [1, 1]} : vector<32x288xf32> to vector<32x32xf32>
    %12 = arith.mulf %11, %11 : vector<32x32xf32>
    %cst_7 = arith.constant dense<0.000000e+00> : vector<32xf32>
    %13 = vector.multi_reduction <add>, %12, %cst_7 [1] : vector<32x32xf32> to vector<32xf32>
    %14 = vector.shape_cast %13 : vector<32xf32> to vector<32x1xf32>
    %cst_8 = arith.constant 1.000000e-24 : f32
    %15 = vector.broadcast %cst_8 : f32 to vector<32x1xf32>
    %16 = arith.maximumf %14, %15 : vector<32x1xf32>
    %17 = math.rsqrt %16 : vector<32x1xf32>
    %18 = vector.broadcast %17 : vector<32x1xf32> to vector<32x32xf32>
    %19 = arith.mulf %11, %18 : vector<32x32xf32>
    %cst_9 = arith.constant 0.000000e+00 : f32
    %20 = vector.broadcast %cst_9 : f32 to vector<32x256xf32>
    %21 = arith.maximumf %10, %20 : vector<32x256xf32>
    %c0_10 = arith.constant 0 : index
    %c0_11 = arith.constant 0 : index
    %c0_12 = arith.constant 0 : index
    %22 = vector.load %arg5[%c0_10, %c0_11, %c0_12] : memref<1x32x256xf32, #tpu.memory_space<vmem>>, vector<1x32x256xf32>
    %23 = vector.shape_cast %22 : vector<1x32x256xf32> to vector<32x256xf32>
    %24 = arith.truncf %19 : vector<32x32xf32> to vector<32x32xbf16>
    %25 = arith.truncf %21 : vector<32x256xf32> to vector<32x256xbf16>
    %cst_13 = arith.constant dense<0.000000e+00> : vector<32x256xf32>
    %26 = tpu.matmul %24, %25, %cst_13 {dimension_numbers = #tpu.dot_dimension_numbers<[0], [0], [1], [1], [0, 1, 1, 1], [], []>} : vector<32x32xbf16>, vector<32x256xbf16>, vector<32x256xf32> -> vector<32x256xf32>
    %27 = arith.addf %23, %26 : vector<32x256xf32>
    %c0_14 = arith.constant 0 : index
    %c0_15 = arith.constant 0 : index
    %c0_16 = arith.constant 0 : index
    %28 = vector.load %arg5[%c0_14, %c0_15, %c0_16] : memref<1x32x256xf32, #tpu.memory_space<vmem>>, vector<1x32x256xf32>
    %29 = vector.shape_cast %28 : vector<1x32x256xf32> to vector<32x256xf32>
    %30 = vector.shape_cast %27 : vector<32x256xf32> to vector<1x32x256xf32>
    tpu.vector_store %arg5[%c0_14, %c0_15, %c0_16], %30 {strides = array<i32>} : memref<1x32x256xf32, #tpu.memory_space<vmem>>, vector<1x32x256xf32>,
    return
  }
  func.func @transform_0(%arg0: i32, %arg1: i32) -> (i32, i32, i32) {
    %c0_i32 = arith.constant 0 : i32
    %c0_i32_0 = arith.constant 0 : i32
    return %arg0, %arg1, %c0_i32 : i32, i32, i32
  }
  func.func @transform_1(%arg0: i32, %arg1: i32) -> (i32, i32) {
    %c0_i32 = arith.constant 0 : i32
    %c0_i32_0 = arith.constant 0 : i32
    %c0_i32_1 = arith.constant 0 : i32
    return %c0_i32, %c0_i32_0 : i32, i32
  }
  func.func @transform_2(%arg0: i32, %arg1: i32) -> (i32, i32) {
    %c0_i32 = arith.constant 0 : i32
    %c0_i32_0 = arith.constant 0 : i32
    %c0_i32_1 = arith.constant 0 : i32
    return %c0_i32, %c0_i32_0 : i32, i32
  }
  func.func @transform_3(%arg0: i32, %arg1: i32) -> (i32, i32, i32) {
    %c0_i32 = arith.constant 0 : i32
    %c0_i32_0 = arith.constant 0 : i32
    %c0_i32_1 = arith.constant 0 : i32
    return %arg0, %c0_i32, %c0_i32_0 : i32, i32, i32
  }
}

</mosaic_0001>

<bundles_post_ra>
// kernel: tpu_custom_call.1
= control target key start
LH: loop header
LB: loop body
LE: loop exit
PB: predicated region body
PF: predicated region fallthrough
CT: control target
= control target key end

     0   :  { %8 = vsyncpa [#allocation3], 0  ;;  %s1737_s0 = inlined_call_operand.hbm [shape: bf16[2,32,256], index: 0, kind: input, shape index: {}]   ;;  %s1738_s1 = inlined_call_operand.hbm [shape: bf16[256,288], index: 1, kind: input, shape index: {}]   ;;  %s1739_s2 = inlined_call_operand.hbm [shape: f32[1,288], index: 2, kind: input, shape index: {}]   ;;  %s1740_s3 = inlined_call_operand.hbm [shape: f32[2,32,256], index: 3, kind: output, shape index: {}]  }
   0x1   :  { %10 = vsyncpa [#allocation3 + $0x1], 0 }
   0x2   :  { %11 = vsyncpa [#allocation6], 0 }
   0x3   :  { %12 = vsyncpa [#allocation4], 0 }
   0x4   :  { %14 = vsyncpa [#allocation4 + $0x1], 0  ;;  %s1446_s12 = smov 0   ;;  %s1448_s13 = smov 0  }
   0x5   :  { %s1450_s14 = smov 0   ;;  %s1452_s15 = smov 0  }
   0x6   :  { %s1454_s16 = smov 0   ;;  %s1456_s17 = smov 0  }
   0x7 LB: > { %s969_s18 = sadd.s32 4294967295, %s1413_s17   ;;  %s970_s19 = sadd.s32 4294967294, %s1413_s17   ;;  %s1413_s17 = sphi %s1456_s17, %s20_s17   ;;  %s1409_s16 = sphi %s1454_s16, %s1762_s16   ;;  %s1405_s15 = sphi %s1452_s15, %s1761_s15   ;;  %s1401_s14 = sphi %s1450_s14, %s1760_s14   ;;  %s1397_s13 = sphi %s1448_s13, %s1759_s13   ;;  %s1393_s12 = sphi %s1446_s12, %s1758_s12  }
   0x8   : > { %p54_p0 = scmp.ne.s32.totalorder %s1397_s13, %s1393_s12  ;;  %p1480_p1 = scmp.eq.s32.totalorder %s969_s18, 0 }
   0x9   : > { %p1484_p2 = scmp.eq.s32.totalorder %s969_s18, 1  ;;  %p126_p3 = scmp.eq.s32.totalorder %s970_s19, 1 }
   0xa   : > { %s1745_s20 = scalar_select %p1480_p1, 1, 0 }
   0xb   : > { %p1490_p4 = por %p1480_p1, %p54_p0  ;;  %p971_p5 = scmp.ge.s32.totalorder %s1413_s17, 1 }
   0xc   : > { %p1495_p6 = por %p126_p3, %p54_p0  ;;  %p133_p7 = scmp.lt.s32.totalorder %s1413_s17, 3 }
   0xd   : > { %s1747_s22 = scalar_select %p1490_p4, 1, 0 }
   0xe   : > { %s1748_s23 = scalar_select %p1495_p6, 1, 0 }
   0xf   : > { %p1500_p8 = pnand %p971_p5, %p133_p7  ;;  %s1415_s25 = smov [#allocation5]  }
  0x10   : > { %s145_s26 = sshll.u32 %s1415_s25, 4  ;;  %s1416_s28 = smov [#allocation7]   ;;  %s1504_s26 = int_to_ptr.vmem [resolvable:$true] %s145_s26 }
  0x11   : > { %p1084_p9 = pneg %p1500_p8  ;;  %s159_s29 = sshll.u32 %s1416_s28, 4  ;;  %s1515_s29 = int_to_ptr.vmem [resolvable:$true] %s159_s29 }
  0x12   : > { %s1241_s5 = scalar_lea.hbm %s1738_s1, 6144 }
  0x13   : > { %p1511_p11 = pnand %p1084_p9, %p1480_p1  ;;  %p1242_p12 = scmp.ne.s32.totalorder %s1738_s1, %s1241_s5 }
  0x14   : > { %p1248_p5 = scmp.lt.u32.totalorder %s1241_s5, %s1738_s1 }
  0x15   : > { %p1243_p13 = pneg %p1511_p11 }
  0x17   : > { %p1244_p0 = pnand %p1243_p13, %p1242_p12 }
  0x19   : > { %p1245_p3 = pneg %p1244_p0 }
  0x1b   : > { %p1250_p7 = pnand %p1248_p5, %p1245_p3 }
  0x1d   : > { %1253 = shalt.err (!%p1250_p7)
}
  0x1e   : > { %s1254_s10 = scalar_lea.vmem %s1504_s26, 6144  ;;  %p1262_p1 = scmp.lt.s32.totalorder %s1504_s26, %s1504_s26 }
  0x1f   : > { %p1255_p9 = scmp.ne.s32.totalorder %s1504_s26, %s1254_s10  ;;  %p1263_p12 = scmp.lt.s32.totalorder %s1254_s10, %s1254_s10 }
  0x21   : > { %p1257_p10 = pnand %p1255_p9, %p1243_p13  ;;  %p1264_p0 = por %p1263_p12, %p1262_p1 }
  0x23   : > { %p1258_p6 = pneg %p1257_p10 }
  0x25   : > { %p1265_p4 = pnand %p1264_p0, %p1258_p6 }
  0x27   : > { %1268 = shalt.err (!%p1265_p4)
}
  0x28   : > { %s1417_s11 = smov 192   ;;  %s1418_s18 = smov 12  }
  0x29   : > { %1087 = dma.hbm_to_vmem [thread:$0]  (!%p1511_p11), %s1738_s1, 6144, %s1504_s26, [#allocation6], %s1417_s11, %s1417_s11, %s1418_s18  }
  0x2a   : > { %s1269_s4 = scalar_lea.hbm %s1739_s2, 48 }
  0x2b   : > { %p1270_p1 = scmp.ne.s32.totalorder %s1739_s2, %s1269_s4  ;;  %p1276_p10 = scmp.lt.u32.totalorder %s1269_s4, %s1739_s2 }
  0x2d   : > { %p1272_p4 = pnand %p1270_p1, %p1243_p13 }
  0x2f   : > { %p1273_p6 = pneg %p1272_p4 }
  0x31   : > { %p1278_p3 = pnand %p1276_p10, %p1273_p6 }
  0x33   : > { %1281 = shalt.err (!%p1278_p3)
}
  0x34   : > { %s1282_s26 = scalar_lea.vmem %s1515_s29, 48  ;;  %s1289_s9 = scalar_lea.vmem %s1515_s29, 64 }
  0x35   : > { %p1283_p5 = scmp.ne.s32.totalorder %s1515_s29, %s1282_s26  ;;  %p1290_p12 = scmp.lt.s32.totalorder %s1515_s29, %s1515_s29 }
  0x36   : > { %p1291_p0 = scmp.lt.s32.totalorder %s1289_s9, %s1282_s26 }
  0x37   : > { %p1285_p7 = pnand %p1283_p5, %p1243_p13 }
  0x38   : > { %p1292_p1 = por %p1291_p0, %p1290_p12 }
  0x39   : > { %p1286_p9 = pneg %p1285_p7 }
  0x3b   : > { %p1293_p4 = pnand %p1292_p1, %p1286_p9 }
  0x3d   : > { %1296 = shalt.err (!%p1293_p4)
}
  0x3e   : > { %1090 = dma.hbm_to_vmem [thread:$0]  (!%p1511_p11), %s1739_s2, 48, %s1515_s29, [#allocation6]  }
  0x3f   : > { %s32_s18 = sadd.s32 1, %s1409_s16  ;;  %s41_s19 = sadd.s32 1, %s1401_s14 }
  0x40   : > { %p34_p13 = scmp.ge.s32.totalorder %s32_s18, 2  ;;  %p48_p6 = scmp.ne.s32.totalorder %s1401_s14, %s1397_s13 }
  0x41   : > { %p49_p10 = scmp.eq.s32.totalorder %s1413_s17, 0  ;;  %p1101_p3 = scmp.lt.s32.totalorder %s1413_s17, 2 }
  0x42   : > { %s1764_s18 = smov (%p34_p13, %s32_s18), 0  ;;  %p1580_p7 = por %p1484_p2, %p48_p6 }
  0x43   : > { %p50_p5 = por %p49_p10, %p48_p6  ;;  %s36_s25 = ssub.s32 %s1409_s16, %s1764_s18 }
  0x44   : > { %s1751_s27 = scalar_select %p1580_p7, 1, 0 }
  0x45   : > { %s170_s28 = sand.u32 1, %s1401_s14   ;;  %p39_p9 = scmp.eq.s32.totalorder %s36_s25, 0 }
  0x46   : > { %s975_s29 = sshll.u32 %s170_s28, 5  ;;  %s1042_s30 = sshll.u32 %s1409_s16, 9 }
  0x47   : > { %s1589_s4 = scalar_select %p39_p9, %s1401_s14, %s41_s19  }
  0x48   : > { %s1594_s7 = scalar_lea.hbm %s1737_s0, %s1042_s30  ;;  %s174_s21 = scalar_lea.vmem [#allocation2], %s975_s29 }
  0x49   : > { %s184_s8 = sshll.u32 %s174_s21, 4  ;;  %p1598_p2 = pnand %p1101_p3, %p50_p5  ;;  %s1602_s8 = int_to_ptr.vmem [resolvable:$true] %s184_s8 }
  0x4a   : > { %s1604_s9 = scalar_lea.sflag [#allocation3], %s170_s28  ;;  %s1297_s10 = scalar_lea.hbm %s1594_s7, 512 }
  0x4b   : > { %p1298_p11 = scmp.ne.s32.totalorder %s1594_s7, %s1297_s10  ;;  %p1299_p12 = pneg %p1598_p2 }
  0x4c   : > { %s1302_s25 = scalar_lea.hbm %s1737_s0, 1024  ;;  %p1303_p4 = scmp.lt.u32.totalorder %s1594_s7, %s1737_s0 }
  0x4d   : > { %p1300_p0 = pnand %p1299_p12, %p1298_p11  ;;  %p1304_p13 = scmp.lt.u32.totalorder %s1302_s25, %s1297_s10 }
  0x4e   : > { %p1306_p10 = scmp.lt.u32.totalorder %s1297_s10, %s1594_s7 }
  0x4f   : > { %p1301_p1 = pneg %p1300_p0  ;;  %p1305_p6 = por %p1304_p13, %p1303_p4 }
  0x51   : > { %p1307_p3 = por %p1306_p10, %p1305_p6 }
  0x53   : > { %p1308_p5 = pnand %p1307_p3, %p1301_p1 }
  0x55   : > { %1311 = shalt.err (!%p1308_p5)
}
  0x56   : > { %s1312_s28 = scalar_lea.vmem %s1602_s8, 512  ;;  %s1419_s5 = smov [#allocation2]  }
  0x57   : > { %p1313_p9 = scmp.ne.s32.totalorder %s1602_s8, %s1312_s28  ;;  %s1317_s6 = sshll.u32 %s1419_s5, 4  ;;  %s1318_s6 = int_to_ptr.vmem [resolvable:$false] %s1317_s6 }
  0x58   : > { %s1319_s21 = scalar_lea.vmem %s1318_s6, 1024  ;;  %p1320_p7 = scmp.lt.s32.totalorder %s1602_s8, %s1318_s6 }
  0x59   : > { %p1315_p11 = pnand %p1313_p9, %p1299_p12  ;;  %p1321_p4 = scmp.lt.s32.totalorder %s1319_s21, %s1312_s28 }
  0x5b   : > { %p1316_p0 = pneg %p1315_p11  ;;  %p1322_p13 = por %p1321_p4, %p1320_p7 }
  0x5d   : > { %p1323_p6 = pnand %p1322_p13, %p1316_p0 }
  0x5f   : > { %1326 = shalt.err (!%p1323_p6)
}
  0x60   : > { %s1420_s10 = smov 128   ;;  %s1421_s11 = smov 8  }
  0x61   : > { %1094 = dma.hbm_to_vmem [thread:$0]  (!%p1598_p2), %s1594_s7, 512, %s1602_s8, %s1604_s9, %s1420_s10, %s1420_s10, %s1421_s11  }
  0x62   : > { %196 = sbr.rel (%p1500_p8) target bundleno = 870 (0x366), region = 32  ;;  %s1635_s19 = sand.u32 (!%p1500_p8), 1, %s1397_s13  }
  0x63   : > { %s979_s25 = sshll.u32 (!%p1500_p8), %s1635_s19, 5  ;;  %s199_s29 = scalar_lea.sflag (!%p1500_p8), [#allocation3], %s1635_s19 }
  0x64   : > { %s1639_s30 = scalar_lea.vmem (!%p1500_p8), [#allocation2], %s979_s25  ;;  %p1753_p7 = scmp.ne.s32.totalorder (!%p1500_p8), %s1747_s22, 0 }
  0x69   : > { %1380 = dma.done.wait (%p1753_p7), %s199_s29, 512  }
  0x6a   : > { %1382 = vsyncadd (%p1753_p7), %s199_s29, 4294966784  ;;  %p1754_p2 = scmp.ne.s32.totalorder %s1745_s20, 0 }
  0x6c   : > { %1384 = dma.done.wait (%p1754_p2), [#allocation6], 6192  }
  0x6d   : > { %1386 = vsyncadd (%p1754_p2), [#allocation6], 4294961104  ;;  %v1163_v0 = vld [vmem:[#allocation5 + $0xc8] ss:$12 sps:$4 sm:$0xff]   ;;  %v1165_v2 = vld [vmem:[#allocation5 + $0xe0] ss:$12 sps:$4 sm:$0xff]   ;;  %v317_v52 = vlaneseq }
  0x6e   : > { %v1164_v1 = vld [vmem:[#allocation5 + $0x8] ss:$12 sps:$4 sm:$0xff]   ;;  %1044 = vmatprep.subr.bf16.mxu1 %v1163_v0  ;;  %v1166_v3 = vld [vmem:[#allocation5 + $0x20] ss:$12 sps:$4 sm:$0xff]   ;;  %v1167_v4 = vld [vmem:[#allocation5 + $0xf8] ss:$12 sps:$4 sm:$0xff]  }
  0x6f   : > { %1045 = vmatpush3.bf16.msra.mxu1 %v1164_v1  ;;  %v1168_v5 = vld [vmem:[#allocation5 + $0x38] ss:$12 sps:$4 sm:$0xff]   ;;  %v1169_v6 = vld [vmem:[#allocation5 + $0x110] ss:$12 sps:$4 sm:$0xff]   ;;  %v1171_v8 = vld [vmem:[#allocation5 + $0x128] ss:$12 sps:$4 sm:$0xff]  }
  0x70   : > { %1046 = vmatprep.subr.bf16.mxu1 %v1165_v2  ;;  %v1170_v7 = vld [vmem:[#allocation5 + $0x50] ss:$12 sps:$4 sm:$0xff]   ;;  %v1172_v9 = vld [vmem:[#allocation5 + $0x68] ss:$12 sps:$4 sm:$0xff]   ;;  %v1173_v10 = vld [vmem:[#allocation5 + $0x140] ss:$12 sps:$4 sm:$0xff]  }
  0x71   : > { %v1181_v11 = vld [vmem:[%s1639_s30 + $0x4] ss:$8 sps:$4 sm:$0xff]   ;;  %v1188_v16 = vld [vmem:[#allocation5 + $0x1c] ss:$12 sps:$4 sm:$0xff]   ;;  %v1191_v19 = vld [vmem:[#allocation5 + $0x34] ss:$12 sps:$4 sm:$0xff]  }
  0x72   : > { %v1174_v12 = vld [vmem:[#allocation5 + $0x80] ss:$12 sps:$4 sm:$0xff]   ;;  %v1175_v13 = vld [vmem:[#allocation5 + $0x158] ss:$12 sps:$4 sm:$0xff]   ;;  %693 = vmatprep.mubr.bf16.mxu1 %v1181_v11  ;;  %640 = vmatprep.mubr.bf16.mxu0 %v1181_v11  ;;  %v1177_v20 = vld [vmem:[#allocation5 + $0x170] ss:$12 sps:$4 sm:$0xff]  }
  0x73   : > { %1047 = vmatpush3.bf16.msra.mxu1 %v1166_v3  ;;  %v1185_v14 = vld [vmem:[#allocation5 + $0x4] ss:$12 sps:$4 sm:$0xff]   ;;  %v1187_v15 = vld [vmem:[#allocation5] ss:$12 sps:$4 sm:$0xff]   ;;  %v1196_v25 = vld [vmem:[#allocation5 + $0x48] ss:$12 sps:$4 sm:$0xff]  }
  0x74   : > { %1048 = vmatprep.subr.bf16.mxu1 %v1167_v4  ;;  %608 = vmatprep.subr.bf16.mxu0 %v1185_v14  ;;  %v1190_v17 = vld [vmem:[#allocation5 + $0x18] ss:$12 sps:$4 sm:$0xff]   ;;  %v1193_v21 = vld [vmem:[#allocation5 + $0x30] ss:$12 sps:$4 sm:$0xff]   ;;  %v1179_v24 = vld [vmem:[%s1639_s30] ss:$8 sps:$4 sm:$0xff]  }
  0x75   : > { %609 = vmatpush1.bf16.msra.mxu0 %v1187_v15  ;;  %v1176_v18 = vld [vmem:[#allocation5 + $0x98] ss:$12 sps:$4 sm:$0xff]   ;;  %v1178_v22 = vld [vmem:[#allocation5 + $0xb0] ss:$12 sps:$4 sm:$0xff]   ;;  %v1199_v28 = vld [vmem:[#allocation5 + $0x60] ss:$12 sps:$4 sm:$0xff]  }
  0x76   : > { %610 = vmatprep.subr.bf16.mxu0 %v1188_v16  ;;  %v1194_v23 = vld [vmem:[#allocation5 + $0x4c] ss:$12 sps:$4 sm:$0xff]   ;;  %v1182_v26 = vld [vmem:[%s1639_s30 + $0x14] ss:$8 sps:$4 sm:$0xff]   ;;  %v1197_v27 = vld [vmem:[#allocation5 + $0x64] ss:$12 sps:$4 sm:$0xff]  }
  0x77   : > { %1049 = vmatpush3.bf16.msra.mxu1 %v1168_v5  ;;  %v1200_v29 = vld [vmem:[#allocation5 + $0x7c] ss:$12 sps:$4 sm:$0xff]   ;;  %v1184_v30 = vld [vmem:[%s1639_s30 + $0x10] ss:$8 sps:$4 sm:$0xff]   ;;  %v1203_v32 = vld [vmem:[#allocation5 + $0x94] ss:$12 sps:$4 sm:$0xff]  }
  0x78   : > { %1050 = vmatprep.subr.bf16.mxu1 %v1169_v6  ;;  %v1202_v31 = vld [vmem:[#allocation5 + $0x78] ss:$12 sps:$4 sm:$0xff]   ;;  %v1205_v33 = vld [vmem:[#allocation5 + $0x90] ss:$12 sps:$4 sm:$0xff]   ;;  %v1208_v35 = vld [vmem:[#allocation5 + $0xa8] ss:$12 sps:$4 sm:$0xff]  }
  0x79   : > { %611 = vmatpush1.bf16.msra.mxu0 %v1190_v17  ;;  %v1206_v34 = vld [vmem:[#allocation5 + $0xac] ss:$12 sps:$4 sm:$0xff]   ;;  %v1209_v36 = vld [vmem:[#allocation5 + $0xc4] ss:$12 sps:$4 sm:$0xff]   ;;  %v1212_v38 = vld [vmem:[#allocation5 + $0xdc] ss:$12 sps:$4 sm:$0xff]  }
  0x7a   : > { %612 = vmatprep.subr.bf16.mxu0 %v1191_v19  ;;  %v1211_v37 = vld [vmem:[#allocation5 + $0xc0] ss:$12 sps:$4 sm:$0xff]   ;;  %v1214_v39 = vld [vmem:[#allocation5 + $0xd8] ss:$12 sps:$4 sm:$0xff]   ;;  %v1217_v41 = vld [vmem:[#allocation5 + $0xf0] ss:$12 sps:$4 sm:$0xff]  }
  0x7b   : > { %1051 = vmatpush3.bf16.msra.mxu1 %v1170_v7  ;;  %v1215_v40 = vld [vmem:[#allocation5 + $0xf4] ss:$12 sps:$4 sm:$0xff]   ;;  %v1218_v42 = vld [vmem:[#allocation5 + $0x10c] ss:$12 sps:$4 sm:$0xff]   ;;  %v1221_v44 = vld [vmem:[#allocation5 + $0x124] ss:$12 sps:$4 sm:$0xff]  }
  0x7c   : > { %1052 = vmatprep.subr.bf16.mxu1 %v1171_v8  ;;  %v1220_v43 = vld [vmem:[#allocation5 + $0x108] ss:$12 sps:$4 sm:$0xff]   ;;  %v1223_v45 = vld [vmem:[#allocation5 + $0x120] ss:$12 sps:$4 sm:$0xff]   ;;  %v1226_v47 = vld [vmem:[#allocation5 + $0x138] ss:$12 sps:$4 sm:$0xff]  }
  0x7d   : > { %613 = vmatpush1.bf16.msra.mxu0 %v1193_v21  ;;  %v1224_v46 = vld [vmem:[#allocation5 + $0x13c] ss:$12 sps:$4 sm:$0xff]   ;;  %v1227_v48 = vld [vmem:[#allocation5 + $0x154] ss:$12 sps:$4 sm:$0xff]   ;;  %v1230_v50 = vld [vmem:[#allocation5 + $0x16c] ss:$12 sps:$4 sm:$0xff]  }
  0x7e   : > { %614 = vmatprep.subr.bf16.mxu0 %v1194_v23  ;;  %v1229_v49 = vld [vmem:[#allocation5 + $0x150] ss:$12 sps:$4 sm:$0xff]   ;;  %v1232_v51 = vld [vmem:[#allocation5 + $0x168] ss:$12 sps:$4 sm:$0xff]   ;;  %v318_v53 = vshrl.u32 %v317_v52, 7  ;;  %vm714_vm0 = vcmask 261120  }
  0x7f   : > { %1053 = vmatpush3.bf16.msra.mxu1 %v1172_v9  ;;  %v315_v55 = vld [vmem:[#allocation7] sm:$0x7]  ;;  %v1422_v17 = vmov 0   ;;  %s982_s20 = sshll.u32 %s1635_s19, 6  ;;  %s1043_s24 = sshll.u32 %s1405_s15, 10 }
  0x80   : > { %1054 = vmatprep.subr.bf16.mxu1 %v1173_v10  ;;  %v327_v54 = vsub.s32 2, %v318_v53  ;;  %v323_v19 = vsub.s32 1, %v318_v53  ;;  %s232_s22 = scalar_lea.vmem [#allocation8], %s982_s20  ;;  %s1686_s9 = scalar_lea.hbm %s1740_s3, %s1043_s24 }
  0x81   : > { %615 = vmatpush1.bf16.msra.mxu0 %v1196_v25  ;;  %s866_s7 = sshll.u32 %s232_s22, 4  ;;  %s853_s28 = scalar_lea.sflag [#allocation4], %s1635_s19  ;;  %s1688_s7 = int_to_ptr.vmem [resolvable:$true] %s866_s7 }
  0x82   : > { %616 = vmatprep.subr.bf16.mxu0 %v1197_v27  ;;  %v328_v57 = vrot.slane %v315_v55, %v327_v54  ;;  %v324_v21 = vrot.slane %v315_v55, %v323_v19  ;;  %s1327_s15 = scalar_lea.vmem %s1688_s7, 1024  ;;  %p1755_p12 = scmp.ne.s32.totalorder %s1751_s27, 0 }
  0x83   : > { %1055 = vmatpush3.bf16.msra.mxu1 %v1174_v12  ;;  %p1328_p8 = scmp.ne.s32.totalorder %s1688_s7, %s1327_s15  ;;  %s1423_s5 = smov [#allocation8]  }
  0x84   : > { %1056 = vmatprep.subr.bf16.mxu1 %v1175_v13  ;;  %s1331_s6 = sshll.u32 %s1423_s5, 4  ;;  %s1332_s6 = int_to_ptr.vmem [resolvable:$false] %s1331_s6 }
  0x85   : > { %617 = vmatpush1.bf16.msra.mxu0 %v1199_v28  ;;  %p1329_p1 = pnand %p1328_p8, %p1755_p12  ;;  %s1333_s21 = scalar_lea.vmem %s1332_s6, 2048 }
  0x86   : > { %618 = vmatprep.subr.bf16.mxu0 %v1200_v29  ;;  %p1334_p3 = scmp.lt.s32.totalorder %s1688_s7, %s1332_s6  ;;  %p1335_p5 = scmp.lt.s32.totalorder %s1333_s21, %s1327_s15 }
  0x87   : > { %1057 = vmatpush3.bf16.msra.mxu1 %v1176_v18  ;;  %v319_v18 = vsub.s32 0, %v318_v53  ;;  %p1330_p10 = pneg %p1329_p1 }
  0x88   : > { %1058 = vmatprep.subr.bf16.mxu1 %v1177_v20  ;;  %p1336_p9 = por %p1335_p5, %p1334_p3 }
  0x89   : > { %619 = vmatpush1.bf16.msra.mxu0 %v1202_v31  ;;  %v320_v20 = vrot.slane %v315_v55, %v319_v18 }
  0x8a   : > { %620 = vmatprep.subr.bf16.mxu0 %v1203_v32  ;;  %p1337_p11 = pnand %p1336_p9, %p1330_p10 }
  0x8b   : > { %1059 = vmatpush3.bf16.msra.mxu1 %v1178_v22 }
  0x8d   : > { %621 = vmatpush1.bf16.msra.mxu0 %v1205_v33 }
  0x8e   : > { %694 = vmatmul.mubr.bf16.vlgmr.msra.gmra.mrb[0].mxu1 %v1179_v24  ;;  %622 = vmatprep.subr.bf16.mxu0 %v1206_v34 }
  0x8f   : > { %701 = vmatprep.mubr.bf16.mxu1 %v1182_v26 }
  0x91   : > { %623 = vmatpush1.bf16.msra.mxu0 %v1208_v35 }
  0x92   : > { %624 = vmatprep.subr.bf16.mxu0 %v1209_v36 }
  0x95   : > { %625 = vmatpush1.bf16.msra.mxu0 %v1211_v37 }
  0x96   : > { %702 = vmatmul.mubr.bf16.gmra.mrb[4].mxu1 %v1184_v30  ;;  %626 = vmatprep.subr.bf16.mxu0 %v1212_v38 }
  0x97   : > { %815 = vmatprep.mubr.bf16.mxu1 %v1422_v17 }
  0x99   : > { %627 = vmatpush1.bf16.msra.mxu0 %v1214_v39 }
  0x9a   : > { %628 = vmatprep.subr.bf16.mxu0 %v1215_v40 }
  0x9d   : > { %629 = vmatpush1.bf16.msra.mxu0 %v1217_v41 }
  0x9e   : > { %630 = vmatprep.subr.bf16.mxu0 %v1218_v42 }
  0xa1   : > { %631 = vmatpush1.bf16.msra.mxu0 %v1220_v43 }
  0xa2   : > { %632 = vmatprep.subr.bf16.mxu0 %v1221_v44 }
  0xa5   : > { %633 = vmatpush1.bf16.msra.mxu0 %v1223_v45 }
  0xa6   : > { %634 = vmatprep.subr.bf16.mxu0 %v1224_v46 }
  0xa9   : > { %635 = vmatpush1.bf16.msra.mxu0 %v1226_v47 }
  0xaa   : > { %636 = vmatprep.subr.bf16.mxu0 %v1227_v48 }
  0xad   : > { %637 = vmatpush1.bf16.msra.mxu0 %v1229_v49 }
  0xae   : > { %638 = vmatprep.subr.bf16.mxu0 %v1230_v50 }
  0xb1   : > { %639 = vmatpush1.bf16.msra.mxu0 %v1232_v51 }
  0xb4   : > { %641 = vmatmul.mubr.bf16.vlgmr.msra.gmra.mrb[0].mxu0 %v1179_v24 }
  0xb5   : > { %650 = vmatprep.mubr.bf16.mxu0 %v1182_v26 }
  0xbc   : > { %651 = vmatmul.mubr.bf16.gmra.mrb[4].mxu0 %v1184_v30 }
 0x161   : > { %v1060_v56 = vpop.f32.mrb[0].mxu1 }
 0x162   : > { %v1061_v58 = vpop.f32.mrb[1].mxu1 }
 0x163   : > { %v1062_v59 = vadd.f32 %v1061_v58, %v1060_v56  ;;  %v1063_v60 = vpop.f32.mrb[2].mxu1 }
 0x164   : > { %v1064_v61 = vpop.f32.mrb[3].mxu1 }
 0x165   : > { %v1653_v62 = vadd.f32 %v1062_v59, %v328_v57  ;;  %v1065_v63 = vadd.f32 %v1064_v61, %v1063_v60 }
 0x167   : > { %v1655_v0 = vadd.f32 %v1065_v63, %v328_v57  ;;  %v710_v1 = vmul.f32 %v1653_v62, %v1653_v62 }
 0x169   : > { %v1066_v2 = vpop.f32.mrb[4].mxu1  ;;  %v715_v3 = vsel %vm714_vm0, %v710_v1, 0.0  ;;  %v711_v4 = vmul.f32 %v1655_v0, %v1655_v0 }
 0x16a   : > { %v1067_v5 = vpop.f32.mrb[5].mxu1  ;;  %716 = vadd.xlane.f32.xlu0 %v715_v3 }
 0x16b   : > { %v1068_v6 = vadd.f32 %v1067_v5, %v1066_v2  ;;  %v1069_v7 = vpop.f32.mrb[6].mxu1  ;;  %v718_v11 = vsel %vm714_vm0, %v711_v4, 0.0 }
 0x16c   : > { %v1070_v8 = vpop.f32.mrb[7].mxu1 }
 0x16d   : > { %v1662_v9 = vadd.f32 %v1068_v6, %v328_v57  ;;  %v1071_v10 = vadd.f32 %v1070_v8, %v1069_v7 }
 0x16e   : > { %719 = vadd.xlane.f32.xlu0 %v718_v11 }
 0x16f   : > { %v1665_v12 = vadd.f32 %v1071_v10, %v328_v57  ;;  %v712_v13 = vmul.f32 %v1662_v9, %v1662_v9 }
 0x171   : > { %v721_v14 = vsel %vm714_vm0, %v712_v13, 0.0  ;;  %v713_v15 = vmul.f32 %v1665_v12, %v1665_v12 }
 0x172   : > { %722 = vadd.xlane.f32.xlu1 %v721_v14 }
 0x173   : > { %v724_v16 = vsel %vm714_vm0, %v713_v15, 0.0 }
 0x176   : > { %725 = vadd.xlane.f32.xlu1 %v724_v16 }
 0x187   : > { %v642_v22 = vpop.f32.mrb[0].mxu0 }
 0x188   : > { %v643_v23 = vadd.f32 %v642_v22, %v320_v20  ;;  %v644_v24 = vpop.f32.mrb[1].mxu0 }
 0x189   : > { %v645_v25 = vadd.f32 %v644_v24, %v324_v21  ;;  %v646_v26 = vpop.f32.mrb[2].mxu0 }
 0x18a   : > { %v739_v27 = vmax.f32 %v643_v23, 0.0  ;;  %v647_v28 = vadd.f32 %v646_v26, %v320_v20  ;;  %v648_v29 = vpop.f32.mrb[3].mxu0 }
 0x18b   : > { %v740_v30 = vmax.f32 %v645_v25, 0.0  ;;  %v649_v31 = vadd.f32 %v648_v29, %v324_v21 }
 0x18c   : > { %v741_v32 = vmax.f32 %v647_v28, 0.0 }
 0x18d   : > { %v742_v33 = vmax.f32 %v649_v31, 0.0 }
 0x18e   : > { %v757_v34 = vpack.c.bf16 %v741_v32, %v739_v27 }
 0x18f   : > { %v758_v35 = vpack.c.bf16 %v742_v33, %v740_v30  ;;  %v652_v36 = vpop.f32.mrb[4].mxu0 }
 0x190   : > { %v653_v37 = vadd.f32 %v652_v36, %v320_v20  ;;  %v654_v38 = vpop.f32.mrb[5].mxu0 }
 0x191   : > { %v655_v39 = vadd.f32 %v654_v38, %v324_v21  ;;  %v656_v40 = vpop.f32.mrb[6].mxu0  ;;  %783 = vmatprep.subr.bf16.mxu1 %v758_v35 }
 0x192   : > { %v743_v41 = vmax.f32 %v653_v37, 0.0  ;;  %v657_v42 = vadd.f32 %v656_v40, %v320_v20  ;;  %v658_v43 = vpop.f32.mrb[7].mxu0  ;;  %784 = vmatpush1.bf16.msra.mxu1 %v757_v34 }
 0x193   : > { %v744_v44 = vmax.f32 %v655_v39, 0.0  ;;  %v659_v45 = vadd.f32 %v658_v43, %v324_v21 }
 0x194   : > { %v745_v46 = vmax.f32 %v657_v42, 0.0 }
 0x195   : > { %v746_v47 = vmax.f32 %v659_v45, 0.0 }
 0x196   : > { %v759_v48 = vpack.c.bf16 %v745_v46, %v743_v41 }
 0x197   : > { %v760_v49 = vpack.c.bf16 %v746_v47, %v744_v44 }
 0x199   : > { %785 = vmatprep.subr.bf16.mxu1 %v760_v49 }
 0x19a   : > { %786 = vmatpush1.bf16.msra.mxu1 %v759_v48 }
 0x1f7   : > { %v717_v50 = vpop.xlane.xlu0 %716 }
 0x1f8   : > { %v727_v51 = vmax.f32 %v717_v50, 1e-24 }
 0x1fa   : > { %1233 = vrsqrt.f32 %v727_v51 }
 0x1fb   : > { %v720_v52 = vpop.xlane.xlu0 %719 }
 0x1fc   : > { %v728_v53 = vmax.f32 %v720_v52, 1e-24 }
 0x1fe   : > { %1235 = vrsqrt.f32 %v728_v53 }
 0x1ff   : > { %v723_v54 = vpop.xlane.xlu1 %722 }
 0x200   : > { %v729_v55 = vmax.f32 %v723_v54, 1e-24 }
 0x202   : > { %1237 = vrsqrt.f32 %v729_v55 }
 0x203   : > { %v726_v56 = vpop.xlane.xlu1 %725 }
 0x204   : > { %v730_v57 = vmax.f32 %v726_v56, 1e-24  ;;  %v1234_v58 = vpop.eup %1233 }
 0x205   : > { %v735_v60 = vmul.f32 %v1234_v58, %v1653_v62 }
 0x206   : > { %1239 = vrsqrt.f32 %v730_v57 }
 0x208   : > { %v1236_v59 = vpop.eup %1235 }
 0x209   : > { %v736_v61 = vmul.f32 %v1236_v59, %v1655_v0 }
 0x20b   : > { %v755_v63 = vpack.c.bf16 %v736_v61, %v735_v60 }
 0x20c   : > { %v1238_v1 = vpop.eup %1237 }
 0x20d   : > { %761 = vxpose.xlu0.c.b16.start [1/2] (short) (narrow) %v755_v63, 32  ;;  %v737_v3 = vmul.f32 %v1238_v1, %v1662_v9 }
 0x210   : > { %v1240_v2 = vpop.eup %1239 }
 0x211   : > { %v738_v4 = vmul.f32 %v1240_v2, %v1665_v12 }
 0x213   : > { %v756_v5 = vpack.c.bf16 %v738_v4, %v737_v3 }
 0x215   : > { %762 = vxpose.xlu0.c.b16.end [2/2] (short) (narrow) %v756_v5, 32 }
 0x277   : > { %v769_v6 = vpop.trf.xlu0 }
 0x278   : > { %1035 = vmatmul.mubr.msk.bf16.vlgmr.msra.gmra.mrb[8].mxu1 %vm714_vm0, %v769_v6 }
 0x279   : > { %825 = vmatprep.mubr.bf16.mxu1 %v1422_v17 }
 0x27b   : > { %v770_v7 = vpop.trf.xlu0 }
 0x280   : > { %1036 = vmatmul.mubr.msk.bf16.gmra.mrb[12].mxu1 %vm714_vm0, %v770_v7 }
 0x34b   : > { %v817_v62 = vpop.f32.mrb[8].mxu1 }
 0x34c   : > { %v819_v0 = vpop.f32.mrb[9].mxu1  ;;  %844 = vst [vmem:[%s232_s22] sm:$0xff] %v817_v62 }
 0x34d   : > { %v821_v8 = vpop.f32.mrb[10].mxu1  ;;  %845 = vst [vmem:[%s232_s22 + $0x8] sm:$0xff] %v819_v0 }
 0x34e   : > { %v823_v9 = vpop.f32.mrb[11].mxu1  ;;  %846 = vst [vmem:[%s232_s22 + $0x10] sm:$0xff] %v821_v8 }
 0x34f   : > { %847 = vst [vmem:[%s232_s22 + $0x18] sm:$0xff] %v823_v9 }
 0x353   : > { %v827_v10 = vpop.f32.mrb[12].mxu1 }
 0x354   : > { %v829_v11 = vpop.f32.mrb[13].mxu1  ;;  %848 = vst [vmem:[%s232_s22 + $0x20] sm:$0xff] %v827_v10 }
 0x355   : > { %v831_v12 = vpop.f32.mrb[14].mxu1  ;;  %849 = vst [vmem:[%s232_s22 + $0x28] sm:$0xff] %v829_v11 }
 0x356   : > { %v833_v13 = vpop.f32.mrb[15].mxu1  ;;  %850 = vst [vmem:[%s232_s22 + $0x30] sm:$0xff] %v831_v12 }
 0x357   : > { %851 = vst [vmem:[%s232_s22 + $0x38] sm:$0xff] %v833_v13 }
 0x358   : > { %1340 = shalt.err (!%p1337_p11)
}
 0x359   : > { %s1341_s10 = scalar_lea.hbm %s1686_s9, 1024  ;;  %s1345_s29 = scalar_lea.hbm %s1740_s3, 2048 }
 0x35a   : > { %p1342_p0 = scmp.ne.s32.totalorder %s1686_s9, %s1341_s10  ;;  %p1346_p6 = scmp.lt.u32.totalorder %s1686_s9, %s1740_s3 }
 0x35b   : > { %p1347_p7 = scmp.lt.u32.totalorder %s1345_s29, %s1341_s10  ;;  %p1349_p8 = scmp.lt.u32.totalorder %s1341_s10, %s1686_s9 }
 0x35c   : > { %p1343_p4 = pnand %p1342_p0, %p1755_p12 }
 0x35d   : > { %p1348_p2 = por %p1347_p7, %p1346_p6 }
 0x35e   : > { %p1344_p13 = pneg %p1343_p4 }
 0x35f   : > { %p1350_p1 = por %p1349_p8, %p1348_p2 }
 0x361   : > { %p1351_p10 = pnand %p1350_p1, %p1344_p13 }
 0x363   : > { %1354 = shalt.err (!%p1351_p10)
}
 0x364   : > { %s1424_s22 = smov 256   ;;  %s1425_s24 = smov 16  }
 0x365   : > { %1082 = dma.vmem_to_hbm [thread:$0]  (%p1755_p12), %s1688_s7, 1024, %s1686_s9, %s853_s28, %s1424_s22, %s1424_s22, %s1425_s24  }
 0x366 PF: > { %s881_s8 = sand.u32 1, %s1393_s12   ;;  %p1756_p3 = scmp.ne.s32.totalorder %s1748_s23, 0 }
 0x367   : > { %p1757_p5 = scmp.ge.s32.totalorder %s1413_s17, 2  ;;  %s882_s26 = scalar_lea.sflag [#allocation4], %s881_s8 }
 0x369   : > { %p1096_p9 = pnand %p1757_p5, %p1756_p3 }
 0x36b   : > { %1388 = dma.done.wait (!%p1096_p9), %s882_s26, 1024  }
 0x36c   : > { %1390 = vsyncadd (!%p1096_p9), %s882_s26, 4294966272  ;;  %s20_s17 = sadd.s32 1, %s1413_s17   ;;  %s1758_s12 = smov %s1397_s13 }
 0x36d   : > { %p17_p11 = scmp.ge.s32.totalorder %s20_s17, 4   ;;  %s1759_s13 = smov %s1401_s14 }
 0x36e   : > { %s1760_s14 = smov %s1589_s4  ;;  %s1761_s15 = smov %s1409_s16 }
 0x36f   : > { %s1762_s16 = smov %s1764_s18  ;;  %19 = sbr.rel (!%p17_p11) target bundleno = 7 (0x7), region = 89 }
 0x376   :  { %887 = vsyncpa [#allocation3], 1 }
 0x377   :  { %889 = vsyncpa [#allocation3 + $0x1], 1 }
 0x378   :  { %890 = vsyncpa [#allocation6], 1 }
 0x379   :  { %891 = vsyncpa [#allocation4], 1 }
 0x37a   :  { %893 = vsyncpa [#allocation4 + $0x1], 1 }

</bundles_post_ra>
